<compile_context>
chip_gen: v7x
topology: tpu7x:2x2x1
jax: 0.10.0
libtpu: 0.0.40
codegen_flags: <defaults>
</compile_context>

<pallas_src>
import functools

import jax
import jax.numpy as jnp
from jax import lax
from jax.experimental import pallas as pl
from jax.experimental.pallas import tpu as pltpu

_LN_EPS = 1e-5


def _round_up(v, m):
    return ((v + m - 1) // m) * m


def _tokenize_kernel(x_ref, g1_ref, b1_ref, w_ref, b_ref, g2_ref, b2_ref, o_ref):
    # x_ref : [TM, Din]  f32 tile of tokens
    # g1/b1 : [1, Din]   first LayerNorm affine
    # w     : [Din, Dout] bf16 linear weight
    # b     : [1, Dout]  linear bias
    # g2/b2 : [1, Dout]  second LayerNorm affine
    # o_ref : [TM, Dout] f32 output tile
    x = x_ref[...].astype(jnp.float32)

    # --- LayerNorm over Din ---
    mu1 = jnp.mean(x, axis=-1, keepdims=True)
    xc = x - mu1
    var1 = jnp.mean(xc * xc, axis=-1, keepdims=True)
    xn = xc * lax.rsqrt(var1 + _LN_EPS)
    xn = xn * g1_ref[...] + b1_ref[...]

    # --- Linear on the MXU: bf16 operands, f32 accumulation ---
    y = jnp.dot(xn.astype(jnp.bfloat16), w_ref[...],
                preferred_element_type=jnp.float32) + b_ref[...]

    # --- LayerNorm over out_dim ---
    mu2 = jnp.mean(y, axis=-1, keepdims=True)
    yc = y - mu2
    var2 = jnp.mean(yc * yc, axis=-1, keepdims=True)
    yn = yc * lax.rsqrt(var2 + _LN_EPS)
    yn = yn * g2_ref[...] + b2_ref[...]

    o_ref[...] = yn.astype(o_ref.dtype)


def seq_2_patches(x, patch_size, step_size):
    """x: [B, C, L] -> [B, N, C*patch_size] (non-overlapping, channel-major)."""
    assert step_size == patch_size, "only non-overlapping patches supported"
    B, C, L = x.shape
    N = L // patch_size
    x = x[:, :, : N * patch_size]                      # crop to divisible length
    x = x.reshape(B, C, N, patch_size)                 # unfold length axis
    x = jnp.transpose(x, (0, 2, 1, 3))                 # [B, N, C, P]
    return x.reshape(B, N, C * patch_size)             # [B, N, C*P]


@functools.partial(jax.jit, static_argnames=("patch_size", "tm"))
def vanilla_1d_tokenization(x, params, *, patch_size=4, tm=4096):
    """x: [B, C, L] float32 -> tokens [B, N, out_dim] float32."""
    g1, b1, w, b, g2, b2 = params
    B, C, L = x.shape
    patches = seq_2_patches(x, patch_size, patch_size)  # [B, N, Din]
    _, N, Din = patches.shape
    Dout = w.shape[1]

    M = B * N
    flat = patches.reshape(M, Din)                       # free (contiguous)

    # Row tile: as large as possible (amortize per-step overhead, fill the MXU)
    # while double-buffered in/out tiles (lanes padded to 128 in VMEM) stay
    # under ~16 MiB, clamped to the actual row count.  No row padding copy:
    # pl.cdiv + ragged last block (OOB rows are never stored).
    bytes_per_row = 4 * 2 * (_round_up(Din, 128) + _round_up(Dout, 128))
    vmem_cap_rows = max(256, (16 * 1024 * 1024) // bytes_per_row)
    tm_eff = min(tm, vmem_cap_rows, _round_up(M, 8))
    tm_eff = max(8, (tm_eff // 8) * 8)
    grid = (pl.cdiv(M, tm_eff),)

    out = pl.pallas_call(
        _tokenize_kernel,
        out_shape=jax.ShapeDtypeStruct((M, Dout), jnp.float32),
        grid_spec=pltpu.PrefetchScalarGridSpec(
            num_scalar_prefetch=0,
            grid=grid,
            in_specs=[
                pl.BlockSpec((tm_eff, Din), lambda i: (i, 0)),   # token tile
                pl.BlockSpec((1, Din), lambda i: (0, 0)),        # gamma1
                pl.BlockSpec((1, Din), lambda i: (0, 0)),        # beta1
                pl.BlockSpec((Din, Dout), lambda i: (0, 0)),     # W (bf16)
                pl.BlockSpec((1, Dout), lambda i: (0, 0)),       # bias
                pl.BlockSpec((1, Dout), lambda i: (0, 0)),       # gamma2
                pl.BlockSpec((1, Dout), lambda i: (0, 0)),       # beta2
            ],
            out_specs=pl.BlockSpec((tm_eff, Dout), lambda i: (i, 0)),
        ),
        compiler_params=pltpu.CompilerParams(
            dimension_semantics=("parallel",),
            vmem_limit_bytes=64 * 1024 * 1024,
        ),
    )(flat, g1, b1, w, b, g2, b2)

    return out.reshape(B, N, Dout)


def init_params(key, channel_size, out_dim, patch_size):
    """Deterministic parameter init matching nn.Sequential(LN, Linear, LN)."""
    patch_dim = patch_size * channel_size
    k_w, k_b = jax.random.split(key)
    g1 = jnp.ones((1, patch_dim), jnp.float32)
    b1 = jnp.zeros((1, patch_dim), jnp.float32)
    bound = 1.0 / (patch_dim ** 0.5)
    w = jax.random.uniform(k_w, (patch_dim, out_dim), jnp.float32, -bound, bound)
    w = w.astype(jnp.bfloat16)   # stored bf16: MXU-native, half the weight DMA
    b = jax.random.uniform(k_b, (1, out_dim), jnp.float32, -bound, bound)
    g2 = jnp.ones((1, out_dim), jnp.float32)
    b2 = jnp.zeros((1, out_dim), jnp.float32)
    return (g1, b1, w, b, g2, b2)


def _reference(x, params, patch_size):
    """Pure-JAX f32 reference for correctness check (same bf16 weight values)."""
    g1, b1, w, b, g2, b2 = params
    w = w.astype(jnp.float32)
    p = seq_2_patches(x, patch_size, patch_size)
    mu = jnp.mean(p, -1, keepdims=True)
    var = jnp.var(p, -1, keepdims=True)
    p = (p - mu) * lax.rsqrt(var + _LN_EPS) * g1[0] + b1[0]
    y = p @ w + b[0]
    mu = jnp.mean(y, -1, keepdims=True)
    var = jnp.var(y, -1, keepdims=True)
    return (y - mu) * lax.rsqrt(var + _LN_EPS) * g2[0] + b2[0]


if __name__ == "__main__":
    B, C, L = 2, 4, 16          # batch, channels, sequence length
    patch_size = 4
    out_dim = 32

    key = jax.random.PRNGKey(0)
    k_x, k_p = jax.random.split(key)
    x = jax.random.normal(k_x, (B, C, L), jnp.float32)
    params = init_params(k_p, C, out_dim, patch_size)

    out = vanilla_1d_tokenization(x, params, patch_size=patch_size)
    out = jax.block_until_ready(out)

    ref = _reference(x, params, patch_size)
    assert out.shape == (B, L // patch_size, out_dim), out.shape
    # bf16 matmul operands (f32 accumulation) -> slightly looser tolerance than
    # a pure-f32 matmul; second LayerNorm keeps outputs O(1).
    assert jnp.allclose(out, ref, atol=2e-2, rtol=2e-2), float(
        jnp.max(jnp.abs(out - ref))
    )
    print("KERNEL_OK")
</pallas_src>

<mosaic_0001>
module attributes {stable_mosaic.version = 11 : i64} {
  func.func @_tokenize_kernel(%arg0: i32, %arg1: memref<8x16xf32, #tpu.memory_space<vmem>>, %arg2: memref<1x16xf32, #tpu.memory_space<vmem>>, %arg3: memref<1x16xf32, #tpu.memory_space<vmem>>, %arg4: memref<16x32xbf16, #tpu.memory_space<vmem>>, %arg5: memref<1x32xf32, #tpu.memory_space<vmem>>, %arg6: memref<1x32xf32, #tpu.memory_space<vmem>>, %arg7: memref<1x32xf32, #tpu.memory_space<vmem>>, %arg8: memref<8x32xf32, #tpu.memory_space<vmem>>) attributes {dimension_semantics = [#tpu.dimension_semantics<parallel>], iteration_bounds = array<i64: 1>, scalar_prefetch = 0 : i64, scratch_operands = 0 : i64, tpu.core_type = #tpu.core_type<tc>, window_params = [{transform_indices = @transform_0, window_bounds = array<i64: 8, 16>}, {pipeline_mode = #tpu.pipeline_mode<synchronous>, transform_indices = @transform_1, window_bounds = array<i64: 1, 16>}, {pipeline_mode = #tpu.pipeline_mode<synchronous>, transform_indices = @transform_2, window_bounds = array<i64: 1, 16>}, {pipeline_mode = #tpu.pipeline_mode<synchronous>, transform_indices = @transform_3, window_bounds = array<i64: 16, 32>}, {pipeline_mode = #tpu.pipeline_mode<synchronous>, transform_indices = @transform_4, window_bounds = array<i64: 1, 32>}, {pipeline_mode = #tpu.pipeline_mode<synchronous>, transform_indices = @transform_5, window_bounds = array<i64: 1, 32>}, {pipeline_mode = #tpu.pipeline_mode<synchronous>, transform_indices = @transform_6, window_bounds = array<i64: 1, 32>}, {transform_indices = @transform_7, window_bounds = array<i64: 8, 32>}]} {
    %c0 = arith.constant 0 : index
    %c0_0 = arith.constant 0 : index
    %0 = vector.load %arg1[%c0, %c0_0] : memref<8x16xf32, #tpu.memory_space<vmem>>, vector<8x16xf32>
    %cst = arith.constant dense<0.000000e+00> : vector<8xf32>
    %1 = vector.multi_reduction <add>, %0, %cst [1] : vector<8x16xf32> to vector<8xf32>
    %2 = vector.shape_cast %1 : vector<8xf32> to vector<8x1xf32>
    %cst_1 = arith.constant 1.600000e+01 : f32
    %3 = vector.broadcast %cst_1 : f32 to vector<8x1xf32>
    %4 = arith.divf %2, %3 : vector<8x1xf32>
    %5 = vector.broadcast %4 : vector<8x1xf32> to vector<8x16xf32>
    %6 = arith.subf %0, %5 : vector<8x16xf32>
    %7 = arith.mulf %6, %6 : vector<8x16xf32>
    %cst_2 = arith.constant dense<0.000000e+00> : vector<8xf32>
    %8 = vector.multi_reduction <add>, %7, %cst_2 [1] : vector<8x16xf32> to vector<8xf32>
    %9 = vector.shape_cast %8 : vector<8xf32> to vector<8x1xf32>
    %cst_3 = arith.constant 1.600000e+01 : f32
    %10 = vector.broadcast %cst_3 : f32 to vector<8x1xf32>
    %11 = arith.divf %9, %10 : vector<8x1xf32>
    %cst_4 = arith.constant 9.99999974E-6 : f32
    %12 = vector.broadcast %cst_4 : f32 to vector<8x1xf32>
    %13 = arith.addf %11, %12 : vector<8x1xf32>
    %14 = math.rsqrt %13 : vector<8x1xf32>
    %15 = vector.broadcast %14 : vector<8x1xf32> to vector<8x16xf32>
    %16 = arith.mulf %6, %15 : vector<8x16xf32>
    %c0_5 = arith.constant 0 : index
    %c0_6 = arith.constant 0 : index
    %17 = vector.load %arg2[%c0_5, %c0_6] : memref<1x16xf32, #tpu.memory_space<vmem>>, vector<1x16xf32>
    %18 = vector.broadcast %17 : vector<1x16xf32> to vector<8x16xf32>
    %19 = arith.mulf %16, %18 : vector<8x16xf32>
    %c0_7 = arith.constant 0 : index
    %c0_8 = arith.constant 0 : index
    %20 = vector.load %arg3[%c0_7, %c0_8] : memref<1x16xf32, #tpu.memory_space<vmem>>, vector<1x16xf32>
    %21 = vector.broadcast %20 : vector<1x16xf32> to vector<8x16xf32>
    %22 = arith.addf %19, %21 : vector<8x16xf32>
    %23 = arith.truncf %22 : vector<8x16xf32> to vector<8x16xbf16>
    %c0_9 = arith.constant 0 : index
    %c0_10 = arith.constant 0 : index
    %24 = vector.load %arg4[%c0_9, %c0_10] : memref<16x32xbf16, #tpu.memory_space<vmem>>, vector<16x32xbf16>
    %cst_11 = arith.constant dense<0.000000e+00> : vector<8x32xf32>
    %25 = tpu.matmul %23, %24, %cst_11 {dimension_numbers = #tpu.dot_dimension_numbers<[1], [0], [0], [1], [0, 0, 1, 1], [], []>} : vector<8x16xbf16>, vector<16x32xbf16>, vector<8x32xf32> -> vector<8x32xf32>
    %c0_12 = arith.constant 0 : index
    %c0_13 = arith.constant 0 : index
    %26 = vector.load %arg5[%c0_12, %c0_13] : memref<1x32xf32, #tpu.memory_space<vmem>>, vector<1x32xf32>
    %27 = vector.broadcast %26 : vector<1x32xf32> to vector<8x32xf32>
    %28 = arith.addf %25, %27 : vector<8x32xf32>
    %cst_14 = arith.constant dense<0.000000e+00> : vector<8xf32>
    %29 = vector.multi_reduction <add>, %28, %cst_14 [1] : vector<8x32xf32> to vector<8xf32>
    %30 = vector.shape_cast %29 : vector<8xf32> to vector<8x1xf32>
    %cst_15 = arith.constant 3.200000e+01 : f32
    %31 = vector.broadcast %cst_15 : f32 to vector<8x1xf32>
    %32 = arith.divf %30, %31 : vector<8x1xf32>
    %33 = vector.broadcast %32 : vector<8x1xf32> to vector<8x32xf32>
    %34 = arith.subf %28, %33 : vector<8x32xf32>
    %35 = arith.mulf %34, %34 : vector<8x32xf32>
    %cst_16 = arith.constant dense<0.000000e+00> : vector<8xf32>
    %36 = vector.multi_reduction <add>, %35, %cst_16 [1] : vector<8x32xf32> to vector<8xf32>
    %37 = vector.shape_cast %36 : vector<8xf32> to vector<8x1xf32>
    %cst_17 = arith.constant 3.200000e+01 : f32
    %38 = vector.broadcast %cst_17 : f32 to vector<8x1xf32>
    %39 = arith.divf %37, %38 : vector<8x1xf32>
    %cst_18 = arith.constant 9.99999974E-6 : f32
    %40 = vector.broadcast %cst_18 : f32 to vector<8x1xf32>
    %41 = arith.addf %39, %40 : vector<8x1xf32>
    %42 = math.rsqrt %41 : vector<8x1xf32>
    %43 = vector.broadcast %42 : vector<8x1xf32> to vector<8x32xf32>
    %44 = arith.mulf %34, %43 : vector<8x32xf32>
    %c0_19 = arith.constant 0 : index
    %c0_20 = arith.constant 0 : index
    %45 = vector.load %arg6[%c0_19, %c0_20] : memref<1x32xf32, #tpu.memory_space<vmem>>, vector<1x32xf32>
    %46 = vector.broadcast %45 : vector<1x32xf32> to vector<8x32xf32>
    %47 = arith.mulf %44, %46 : vector<8x32xf32>
    %c0_21 = arith.constant 0 : index
    %c0_22 = arith.constant 0 : index
    %48 = vector.load %arg7[%c0_21, %c0_22] : memref<1x32xf32, #tpu.memory_space<vmem>>, vector<1x32xf32>
    %49 = vector.broadcast %48 : vector<1x32xf32> to vector<8x32xf32>
    %50 = arith.addf %47, %49 : vector<8x32xf32>
    %c0_23 = arith.constant 0 : index
    %c0_24 = arith.constant 0 : index
    %51 = vector.load %arg8[%c0_23, %c0_24] : memref<8x32xf32, #tpu.memory_space<vmem>>, vector<8x32xf32>
    tpu.vector_store %arg8[%c0_23, %c0_24], %50 {strides = array<i32>} : memref<8x32xf32, #tpu.memory_space<vmem>>, vector<8x32xf32>,
    return
  }
  func.func @transform_0(%arg0: i32) -> (i32, i32) {
    %c0_i32 = arith.constant 0 : i32
    %c0_i32_0 = arith.constant 0 : i32
    return %arg0, %c0_i32 : i32, i32
  }
  func.func @transform_1(%arg0: i32) -> (i32, i32) {
    %c0_i32 = arith.constant 0 : i32
    %c0_i32_0 = arith.constant 0 : i32
    %c0_i32_1 = arith.constant 0 : i32
    return %c0_i32, %c0_i32_0 : i32, i32
  }
  func.func @transform_2(%arg0: i32) -> (i32, i32) {
    %c0_i32 = arith.constant 0 : i32
    %c0_i32_0 = arith.constant 0 : i32
    %c0_i32_1 = arith.constant 0 : i32
    return %c0_i32, %c0_i32_0 : i32, i32
  }
  func.func @transform_3(%arg0: i32) -> (i32, i32) {
    %c0_i32 = arith.constant 0 : i32
    %c0_i32_0 = arith.constant 0 : i32
    %c0_i32_1 = arith.constant 0 : i32
    return %c0_i32, %c0_i32_0 : i32, i32
  }
  func.func @transform_4(%arg0: i32) -> (i32, i32) {
    %c0_i32 = arith.constant 0 : i32
    %c0_i32_0 = arith.constant 0 : i32
    %c0_i32_1 = arith.constant 0 : i32
    return %c0_i32, %c0_i32_0 : i32, i32
  }
  func.func @transform_5(%arg0: i32) -> (i32, i32) {
    %c0_i32 = arith.constant 0 : i32
    %c0_i32_0 = arith.constant 0 : i32
    %c0_i32_1 = arith.constant 0 : i32
    return %c0_i32, %c0_i32_0 : i32, i32
  }
  func.func @transform_6(%arg0: i32) -> (i32, i32) {
    %c0_i32 = arith.constant 0 : i32
    %c0_i32_0 = arith.constant 0 : i32
    %c0_i32_1 = arith.constant 0 : i32
    return %c0_i32, %c0_i32_0 : i32, i32
  }
  func.func @transform_7(%arg0: i32) -> (i32, i32) {
    %c0_i32 = arith.constant 0 : i32
    %c0_i32_0 = arith.constant 0 : i32
    return %arg0, %c0_i32 : i32, i32
  }
}

</mosaic_0001>

<bundles_post_ra>
// kernel: vanilla_1d_tokenization.1
= control target key start
LH: loop header
LB: loop body
LE: loop exit
PB: predicated region body
PF: predicated region fallthrough
CT: control target
= control target key end

     0   :  { %12 = vsyncpa [#allocation3], 0  ;;  %s631_s0 = inlined_call_operand.hbm [shape: f32[8,16], index: 0, kind: input, shape index: {}]   ;;  %s632_s1 = inlined_call_operand.hbm [shape: f32[1,16], index: 1, kind: input, shape index: {}]   ;;  %s633_s2 = inlined_call_operand.hbm [shape: f32[1,16], index: 2, kind: input, shape index: {}]   ;;  %s634_s3 = inlined_call_operand.hbm [shape: bf16[16,32], index: 3, kind: input, shape index: {}]   ;;  %s635_s4 = inlined_call_operand.hbm [shape: f32[1,32], index: 4, kind: input, shape index: {}]   ;;  %s636_s5 = inlined_call_operand.hbm [shape: f32[1,32], index: 5, kind: input, shape index: {}]   ;;  %s637_s6 = inlined_call_operand.hbm [shape: f32[1,32], index: 6, kind: input, shape index: {}]   ;;  %s638_s7 = inlined_call_operand.hbm [shape: f32[8,32], index: 7, kind: output, shape index: {}]  }
   0x1   :  { %13 = vsyncpa [#allocation6], 0 }
   0x2   :  { %14 = vsyncpa [#allocation9], 0 }
   0x3   :  { %15 = vsyncpa [#allocation12], 0 }
   0x4   :  { %16 = vsyncpa [#allocation4], 0  ;;  %s470_s24 = smov [#allocation5]   ;;  %s471_s26 = smov [#allocation8]  }
   0x5   :  { %s33_s25 = sshll.u32 %s470_s24, 4  ;;  %s52_s27 = sshll.u32 %s471_s26, 4  ;;  %s34_s25 = int_to_ptr.vmem [resolvable:$true] %s33_s25  ;;  %s522_s27 = int_to_ptr.vmem [resolvable:$true] %s52_s27 }
   0x6   :  { %s284_s30 = scalar_lea.hbm %s632_s1, 16 }
   0x7   :  { %p285_p0 = scmp.ne.s32.totalorder %s632_s1, %s284_s30  ;;  %p288_p1 = scmp.lt.u32.totalorder %s284_s30, %s632_s1 }
   0x9   :  { %p290_p2 = pnand %p288_p1, %p285_p0 }
   0xb   :  { %293 = shalt.err (!%p290_p2)
}
   0xc   :  { %s294_s12 = scalar_lea.vmem %s34_s25, 16  ;;  %s298_s13 = scalar_lea.vmem %s34_s25, 32 }
   0xd   :  { %p295_p3 = scmp.ne.s32.totalorder %s34_s25, %s294_s12  ;;  %p299_p4 = scmp.lt.s32.totalorder %s34_s25, %s34_s25 }
   0xe   :  { %p300_p5 = scmp.lt.s32.totalorder %s298_s13, %s294_s12 }
  0x10   :  { %p301_p6 = por %p300_p5, %p299_p4 }
  0x12   :  { %p302_p7 = pnand %p301_p6, %p295_p3 }
  0x14   :  { %305 = shalt.err (!%p302_p7)
}
  0x15   :  { %36 = dma.hbm_to_vmem [thread:$0]  %s632_s1, 16, %s34_s25, [#allocation6]  }
  0x16   :  { %s306_s18 = scalar_lea.hbm %s634_s3, 128 }
  0x17   :  { %p307_p8 = scmp.ne.s32.totalorder %s634_s3, %s306_s18  ;;  %p310_p9 = scmp.lt.u32.totalorder %s306_s18, %s634_s3 }
  0x19   :  { %p312_p10 = pnand %p310_p9, %p307_p8 }
  0x1b   :  { %315 = shalt.err (!%p312_p10)
}
  0x1c   :  { %s316_s23 = scalar_lea.vmem %s522_s27, 128  ;;  %p321_p12 = scmp.lt.s32.totalorder %s522_s27, %s522_s27 }
  0x1d   :  { %p317_p11 = scmp.ne.s32.totalorder %s522_s27, %s316_s23  ;;  %p322_p13 = scmp.lt.s32.totalorder %s316_s23, %s316_s23 }
  0x1f   :  { %p323_p0 = por %p322_p13, %p321_p12 }
  0x21   :  { %p324_p1 = pnand %p323_p0, %p317_p11 }
  0x23   :  { %327 = shalt.err (!%p324_p1)
}
  0x24   :  { %s472_s1 = smov 64   ;;  %s473_s24 = smov 4  }
  0x25   :  { %58 = dma.hbm_to_vmem [thread:$0]  %s634_s3, 128, %s522_s27, [#allocation9], %s472_s1, %s472_s1, %s473_s24  }
  0x26   :  { %s474_s28 = smov [#allocation11]   ;;  %s475_s30 = smov [#allocation2]  }
  0x27   :  { %s75_s29 = sshll.u32 %s474_s28, 4  ;;  %s23_s8 = sshll.u32 %s475_s30, 4  ;;  %s76_s29 = int_to_ptr.vmem [resolvable:$true] %s75_s29  ;;  %s24_s8 = int_to_ptr.vmem [resolvable:$true] %s23_s8 }
  0x28   :  { %s328_s11 = scalar_lea.hbm %s636_s5, 16 }
  0x29   :  { %p329_p2 = scmp.ne.s32.totalorder %s636_s5, %s328_s11  ;;  %p332_p3 = scmp.lt.u32.totalorder %s328_s11, %s636_s5 }
  0x2b   :  { %p334_p4 = pnand %p332_p3, %p329_p2 }
  0x2d   :  { %337 = shalt.err (!%p334_p4)
}
  0x2e   :  { %s338_s3 = scalar_lea.vmem %s76_s29, 16  ;;  %s342_s27 = scalar_lea.vmem %s76_s29, 32 }
  0x2f   :  { %p339_p5 = scmp.ne.s32.totalorder %s76_s29, %s338_s3  ;;  %p343_p6 = scmp.lt.s32.totalorder %s76_s29, %s76_s29 }
  0x30   :  { %p344_p7 = scmp.lt.s32.totalorder %s342_s27, %s338_s3 }
  0x32   :  { %p345_p8 = por %p344_p7, %p343_p6 }
  0x34   :  { %p346_p9 = pnand %p345_p8, %p339_p5 }
  0x36   :  { %349 = shalt.err (!%p346_p9)
}
  0x37   :  { %78 = dma.hbm_to_vmem [thread:$0]  %s636_s5, 16, %s76_s29, [#allocation12]  }
  0x38   :  { %s350_s20 = scalar_lea.hbm %s631_s0, 128 }
  0x39   :  { %p351_p10 = scmp.ne.s32.totalorder %s631_s0, %s350_s20  ;;  %p354_p11 = scmp.lt.u32.totalorder %s350_s20, %s631_s0 }
  0x3b   :  { %p356_p12 = pnand %p354_p11, %p351_p10 }
  0x3d   :  { %359 = shalt.err (!%p356_p12)
}
  0x3e   :  { %s360_s24 = scalar_lea.vmem %s24_s8, 128  ;;  %p365_p0 = scmp.lt.s32.totalorder %s24_s8, %s24_s8 }
  0x3f   :  { %p361_p13 = scmp.ne.s32.totalorder %s24_s8, %s360_s24  ;;  %p366_p1 = scmp.lt.s32.totalorder %s360_s24, %s360_s24 }
  0x41   :  { %p367_p2 = por %p366_p1, %p365_p0 }
  0x43   :  { %p368_p3 = pnand %p367_p2, %p361_p13 }
  0x45   :  { %371 = shalt.err (!%p368_p3)
}
  0x46   :  { %26 = dma.hbm_to_vmem [thread:$0]  %s631_s0, 128, %s24_s8, [#allocation3]  }
  0x47   :  { %s476_s26 = smov [#allocation7]   ;;  %s477_s29 = smov [#allocation10]  }
  0x48   :  { %s43_s28 = sshll.u32 %s476_s26, 4  ;;  %s65_s30 = sshll.u32 %s477_s29, 4  ;;  %s44_s28 = int_to_ptr.vmem [resolvable:$true] %s43_s28  ;;  %s66_s30 = int_to_ptr.vmem [resolvable:$true] %s65_s30 }
  0x49   :  { %s372_s11 = scalar_lea.hbm %s633_s2, 16 }
  0x4a   :  { %p373_p4 = scmp.ne.s32.totalorder %s633_s2, %s372_s11  ;;  %p376_p5 = scmp.lt.u32.totalorder %s372_s11, %s633_s2 }
  0x4c   :  { %p378_p6 = pnand %p376_p5, %p373_p4 }
  0x4e   :  { %381 = shalt.err (!%p378_p6)
}
  0x4f   :  { %s382_s0 = scalar_lea.vmem %s44_s28, 16  ;;  %s386_s8 = scalar_lea.vmem %s44_s28, 32 }
  0x50   :  { %p383_p7 = scmp.ne.s32.totalorder %s44_s28, %s382_s0  ;;  %p387_p8 = scmp.lt.s32.totalorder %s44_s28, %s44_s28 }
  0x51   :  { %p388_p9 = scmp.lt.s32.totalorder %s386_s8, %s382_s0 }
  0x53   :  { %p389_p10 = por %p388_p9, %p387_p8 }
  0x55   :  { %p390_p11 = pnand %p389_p10, %p383_p7 }
  0x57   :  { %393 = shalt.err (!%p390_p11)
}
  0x58   :  { %46 = dma.hbm_to_vmem [thread:$0]  %s633_s2, 16, %s44_s28, [#allocation6]  }
  0x59   :  { %s394_s18 = scalar_lea.hbm %s635_s4, 16 }
  0x5a   :  { %p395_p12 = scmp.ne.s32.totalorder %s635_s4, %s394_s18  ;;  %p398_p13 = scmp.lt.u32.totalorder %s394_s18, %s635_s4 }
  0x5c   :  { %p400_p0 = pnand %p398_p13, %p395_p12 }
  0x5e   :  { %403 = shalt.err (!%p400_p0)
}
  0x5f   :  { %s404_s23 = scalar_lea.vmem %s66_s30, 16  ;;  %s408_s1 = scalar_lea.vmem %s66_s30, 32 }
  0x60   :  { %p405_p1 = scmp.ne.s32.totalorder %s66_s30, %s404_s23  ;;  %p409_p2 = scmp.lt.s32.totalorder %s66_s30, %s66_s30 }
  0x61   :  { %p410_p3 = scmp.lt.s32.totalorder %s408_s1, %s404_s23 }
  0x63   :  { %p411_p4 = por %p410_p3, %p409_p2 }
  0x65   :  { %p412_p5 = pnand %p411_p4, %p405_p1 }
  0x67   :  { %415 = shalt.err (!%p412_p5)
}
  0x68   :  { %68 = dma.hbm_to_vmem [thread:$0]  %s635_s4, 16, %s66_s30, [#allocation9]  }
  0x69   :  { %s478_s5 = smov [#allocation13]   ;;  %s416_s29 = scalar_lea.hbm %s637_s6, 16 }
  0x6a   :  { %s85_s25 = sshll.u32 %s478_s5, 4  ;;  %p417_p6 = scmp.ne.s32.totalorder %s637_s6, %s416_s29  ;;  %s86_s25 = int_to_ptr.vmem [resolvable:$true] %s85_s25 }
  0x6b   :  { %p420_p7 = scmp.lt.u32.totalorder %s416_s29, %s637_s6 }
  0x6d   :  { %p422_p8 = pnand %p420_p7, %p417_p6 }
  0x6f   :  { %425 = shalt.err (!%p422_p8)
}
  0x70   :  { %s426_s13 = scalar_lea.vmem %s86_s25, 16  ;;  %s430_s4 = scalar_lea.vmem %s86_s25, 32 }
  0x71   :  { %p427_p9 = scmp.ne.s32.totalorder %s86_s25, %s426_s13  ;;  %p431_p10 = scmp.lt.s32.totalorder %s86_s25, %s86_s25 }
  0x72   :  { %p432_p11 = scmp.lt.s32.totalorder %s430_s4, %s426_s13 }
  0x74   :  { %p433_p12 = por %p432_p11, %p431_p10 }
  0x76   :  { %p434_p13 = pnand %p433_p12, %p427_p9 }
  0x78   :  { %437 = shalt.err (!%p434_p13)
}
  0x79   :  { %88 = dma.hbm_to_vmem [thread:$0]  %s637_s6, 16, %s86_s25, [#allocation12]  }
  0x7a   :  { %460 = dma.done.wait [#allocation3], 128  }
  0x7b   :  { %461 = vsyncadd [#allocation3], 4294967168 }
  0x7c   :  { %462 = dma.done.wait [#allocation6], 32  }
  0x7d   :  { %463 = vsyncadd [#allocation6], 4294967264 }
  0x7e   :  { %464 = dma.done.wait [#allocation9], 144  }
  0x7f   :  { %465 = vsyncadd [#allocation9], 4294967152 }
  0x80   :  { %466 = dma.done.wait [#allocation12], 32  }
  0x81   :  { %467 = vsyncadd [#allocation12], 4294967264  ;;  %vm112_vm0 = vcmask 130048   ;;  %v111_v0 = vld [vmem:[#allocation2] sm:$0xff]  ;;  %v279_v7 = vld [vmem:[#allocation8] sm:$0xff]   ;;  %v479_v8 = vmov 0.0  }
  0x82   :  { %v113_v1 = vsel %vm112_vm0, %v111_v0, 0.0  ;;  %261 = vmatprep.subr.bf16.mxu0 %v479_v8  ;;  %vm480_vm1 = vmmov 0   ;;  %v252_v13 = vld [vmem:[#allocation5] ss:$0 sm:$0xff]  ;;  %v253_v15 = vld [vmem:[#allocation7] ss:$0 sm:$0xff] }
  0x83   :  { %114 = vadd.xlane.f32.xlu0 %v113_v1  ;;  %263 = vmatprep.mubr.msk.bf16.mxu0 %vm480_vm1, %v479_v8  ;;  %v254_v19 = vld [vmem:[#allocation10] ss:$0 sm:$0xff]  ;;  %vm202_vm2 = vcmask 261120   ;;  %v257_v35 = vld [vmem:[#allocation11] ss:$0 sm:$0xff]  ;;  %s481_s6 = smov [#allocation14]  }
  0x84   :  { %262 = vmatpush3.bf16.msra.mxu0 %v279_v7  ;;  %v258_v37 = vld [vmem:[#allocation13] ss:$0 sm:$0xff]  ;;  %s240_s15 = sshll.u32 %s481_s6, 4  ;;  %s241_s15 = int_to_ptr.vmem [resolvable:$true] %s240_s15 }
  0x85   :  { %s438_s0 = scalar_lea.vmem %s241_s15, 128  ;;  %p443_p1 = scmp.lt.s32.totalorder %s241_s15, %s241_s15 }
  0x86   :  { %p439_p0 = scmp.ne.s32.totalorder %s241_s15, %s438_s0  ;;  %p444_p2 = scmp.lt.s32.totalorder %s438_s0, %s438_s0 }
  0x88   :  { %p445_p3 = por %p444_p2, %p443_p1 }
  0x8a   :  { %p446_p4 = pnand %p445_p3, %p439_p0 }
 0x110   :  { %v115_v2 = vpop.xlane.xlu0 %114 }
 0x111   :  { %v117_v3 = vmul.f32 0.0625, %v115_v2 }
 0x113   :  { %v118_v4 = vsub.f32 %v111_v0, %v117_v3 }
 0x115   :  { %v119_v5 = vmul.f32 %v118_v4, %v118_v4 }
 0x117   :  { %v120_v6 = vsel %vm112_vm0, %v119_v5, 0.0 }
 0x118   :  { %121 = vadd.xlane.f32.xlu0 %v120_v6 }
 0x1a5   :  { %v122_v9 = vpop.xlane.xlu0 %121 }
 0x1a6   :  { %v123_v10 = vmul.f32 0.0625, %v122_v9 }
 0x1a8   :  { %v124_v11 = vadd.f32 1e-05, %v123_v10 }
 0x1aa   :  { %280 = vrsqrt.f32 %v124_v11 }
 0x1b4   :  { %v281_v12 = vpop.eup %280 }
 0x1b5   :  { %v126_v14 = vmul.f32 %v281_v12, %v118_v4 }
 0x1b7   :  { %v134_v16 = vmul.f32 %v252_v13, %v126_v14 }
 0x1b9   :  { %v142_v17 = vadd.f32 %v253_v15, %v134_v16 }
 0x1bb   :  { %v143_v18 = vpack.c.bf16 %v142_v17, %v142_v17 }
 0x1bd   :  { %264 = vmatmul.mubr.msk.bf16.vlgmr.msra.gmra.mrb[0].mxu0 %vm112_vm0, %v143_v18 }
 0x290   :  { %v196_v20 = vpop.f32.mrb[0].mxu0 }
 0x291   :  { %v197_v21 = vadd.f32 %v254_v19, %v196_v20  ;;  %v265_v22 = vpop.f32.mrb[1].mxu0 }
 0x292   :  { %v199_v23 = vpop.f32.mrb[2].mxu0 }
 0x293   :  { %v266_v24 = vpop.f32.mrb[3].mxu0  ;;  %v203_v25 = vsel %vm202_vm2, %v197_v21, 0.0 }
 0x294   :  { %204 = vadd.xlane.f32.xlu1 %v203_v25 }
 0x321   :  { %v205_v26 = vpop.xlane.xlu1 %204 }
 0x322   :  { %v207_v27 = vmul.f32 0.03125, %v205_v26 }
 0x324   :  { %v208_v28 = vsub.f32 %v197_v21, %v207_v27 }
 0x326   :  { %v209_v29 = vmul.f32 %v208_v28, %v208_v28 }
 0x328   :  { %v210_v30 = vsel %vm202_vm2, %v209_v29, 0.0 }
 0x329   :  { %211 = vadd.xlane.f32.xlu1 %v210_v30 }
 0x3b6   :  { %v212_v31 = vpop.xlane.xlu1 %211 }
 0x3b7   :  { %v213_v32 = vmul.f32 0.03125, %v212_v31 }
 0x3b9   :  { %v214_v33 = vadd.f32 1e-05, %v213_v32 }
 0x3bb   :  { %282 = vrsqrt.f32 %v214_v33 }
 0x3c5   :  { %v283_v34 = vpop.eup %282 }
 0x3c6   :  { %v216_v36 = vmul.f32 %v283_v34, %v208_v28 }
 0x3c8   :  { %v224_v38 = vmul.f32 %v257_v35, %v216_v36 }
 0x3ca   :  { %v232_v39 = vadd.f32 %v258_v37, %v224_v38 }
 0x3cc   :  { %233 = vst.msk [vmem:[#allocation14] sm:$0xff] %vm202_vm2, %v232_v39 }
 0x3cd   :  { %449 = shalt.err (!%p446_p4)
}
 0x3ce   :  { %s450_s27 = scalar_lea.hbm %s638_s7, 128 }
 0x3cf   :  { %p451_p5 = scmp.ne.s32.totalorder %s638_s7, %s450_s27  ;;  %p454_p6 = scmp.lt.u32.totalorder %s450_s27, %s638_s7 }
 0x3d1   :  { %p456_p7 = pnand %p454_p6, %p451_p5 }
 0x3d3   :  { %459 = shalt.err (!%p456_p7)
}
 0x3d4   :  { %243 = dma.vmem_to_hbm [thread:$0]  %s241_s15, 128, %s638_s7, [#allocation4]  }
 0x3d5   :  { %468 = dma.done.wait [#allocation4], 128  }
 0x3d6   :  { %469 = vsyncadd [#allocation4], 4294967168 }
 0x3d7   :  { %247 = vsyncpa [#allocation3], 1 }
 0x3d8   :  { %248 = vsyncpa [#allocation6], 1 }
 0x3d9   :  { %249 = vsyncpa [#allocation9], 1 }
 0x3da   :  { %250 = vsyncpa [#allocation12], 1 }
 0x3db   :  { %251 = vsyncpa [#allocation4], 1 }

</bundles_post_ra>
